<compile_context>
chip_gen: v7x
topology: tpu7x:2x2x1
jax: 0.10.0
libtpu: 0.0.40
codegen_flags: <defaults>
</compile_context>

<pallas_src>
import math

import jax
import jax.numpy as jnp
from jax.experimental import pallas as pl
from jax.experimental.pallas import tpu as pltpu

LANE = 128
_VMEM_TILE_BUDGET = 24 * 1024 * 1024   # budget for the double-buffered input tile
_VMEM_LIMIT_BYTES = 48 * 1024 * 1024   # scoped VMEM limit (safe on v5e/v6e/v7x)
_MAX_TN = 2048


def _fill_value(dtype):
    if jnp.issubdtype(dtype, jnp.floating):
        return float("-inf")
    return int(jnp.iinfo(dtype).min)


def _choose_c_block(C: int) -> int:
    # Block C only when it splits into >= 2 lane-aligned blocks: gives a
    # "parallel" grid axis (v7x megacore) and bounds per-tile VMEM.
    for cand in (512, 256, 128):
        if C % cand == 0 and C // cand >= 2:
            return cand
    return C


def _choose_n_tile(B: int, tc: int, N: int, itemsize: int) -> int:
    # Largest multiple of 128 whose double-buffered input tile fits the budget.
    max_by_budget = _VMEM_TILE_BUDGET // (2 * B * tc * itemsize)
    tn = min(_MAX_TN, max_by_budget, pl.cdiv(N, LANE) * LANE)
    tn = max(LANE, (tn // LANE) * LANE)
    return tn


def _make_maxpool_kernel(N: int, tn: int, n_k: int, fill):
    n_chunks = tn // LANE
    needs_mask = (N % tn) != 0  # last N-tile is partial -> mask out-of-range lanes

    def kernel(x_ref, o_ref, acc_ref):
        k = pl.program_id(1)

        @pl.when(k == 0)
        def _init():
            acc_ref[...] = jnp.full(acc_ref.shape, fill, acc_ref.dtype)

        def load_chunk(i):
            chunk = x_ref[:, :, i * LANE:(i + 1) * LANE]  # (B, tc, 128), lane-aligned
            if needs_mask:
                lane = jax.lax.broadcasted_iota(jnp.int32, chunk.shape, 2)
                idx = k * tn + i * LANE + lane
                chunk = jnp.where(idx < N, chunk,
                                  jnp.full(chunk.shape, fill, chunk.dtype))
            return chunk

        # VPU-only elementwise maxima across the lane-aligned chunks of this tile.
        local = load_chunk(0)
        for i in range(1, n_chunks):
            local = jnp.maximum(local, load_chunk(i))
        acc_ref[...] = jnp.maximum(acc_ref[...], local)

        # One cross-lane (XLU) reduce, only on the final reduction step.
        @pl.when(k == n_k - 1)
        def _finalize():
            o_ref[...] = jnp.max(acc_ref[...], axis=-1).astype(o_ref.dtype)

    return kernel


def max_pool(x: jax.Array) -> jax.Array:
    """Pallas equivalent of `torch.max(x, -1)[0]` for x of shape (..., C, N)."""
    if x.ndim < 2:
        # Degenerate 1-D case: nothing to tile.
        return jnp.max(x, axis=-1)

    orig_shape = x.shape
    N = orig_shape[-1]
    C = orig_shape[-2]
    B = math.prod(orig_shape[:-2]) if len(orig_shape) > 2 else 1
    x3 = x.reshape(B, C, N)

    tc = _choose_c_block(C)
    tn = _choose_n_tile(B, tc, N, x3.dtype.itemsize)
    n_k = pl.cdiv(N, tn)
    fill = _fill_value(x3.dtype)

    kernel = _make_maxpool_kernel(N, tn, n_k, fill)

    out = pl.pallas_call(
        kernel,
        out_shape=jax.ShapeDtypeStruct((B, C), x3.dtype),
        grid_spec=pltpu.PrefetchScalarGridSpec(
            num_scalar_prefetch=0,
            grid=(C // tc, n_k),                       # (parallel C blocks, reduction)
            in_specs=[pl.BlockSpec((B, tc, tn), lambda c, k: (0, c, k))],
            out_specs=pl.BlockSpec((B, tc), lambda c, k: (0, c)),
            scratch_shapes=[pltpu.VMEM((B, tc, LANE), x3.dtype)],
        ),
        compiler_params=pltpu.CompilerParams(
            dimension_semantics=("parallel", "arbitrary"),
            vmem_limit_bytes=_VMEM_LIMIT_BYTES,
        ),
    )(x3)

    return out.reshape(orig_shape[:-1])


if __name__ == "__main__":
    # Small deterministic example consistent with PointNet usage: (B, C, N).
    key = jax.random.PRNGKey(0)
    B, C, N = 2, 8, 256
    x = jax.random.normal(key, (B, C, N), dtype=jnp.float32)

    out = jax.block_until_ready(max_pool(x))
    ref = jnp.max(x, axis=-1)
    assert out.shape == (B, C)
    assert out.dtype == x.dtype
    assert jnp.allclose(out, ref), "mismatch vs reference"

    # Exercise the ragged-N (tail-masking) path as well.
    x2 = jax.random.normal(jax.random.PRNGKey(1), (2, 8, 200), dtype=jnp.float32)
    out2 = jax.block_until_ready(max_pool(x2))
    assert jnp.allclose(out2, jnp.max(x2, axis=-1)), "mismatch vs reference (ragged N)"

    print("KERNEL_OK")
</pallas_src>

<mosaic_0001>
module attributes {stable_mosaic.version = 11 : i64} {
  func.func @kernel(%arg0: i32, %arg1: i32, %arg2: memref<2x8x256xf32, #tpu.memory_space<vmem>>, %arg3: memref<2x8xf32, #tpu.memory_space<vmem>>, %arg4: memref<2x8x128xf32, #tpu.memory_space<vmem>>) attributes {dimension_semantics = [#tpu.dimension_semantics<parallel>, #tpu.dimension_semantics<arbitrary>], iteration_bounds = array<i64: 1, 1>, scalar_prefetch = 0 : i64, scratch_operands = 1 : i64, tpu.core_type = #tpu.core_type<tc>, window_params = [{transform_indices = @transform_0, window_bounds = array<i64: 2, 8, 256>}, {transform_indices = @transform_1, window_bounds = array<i64: 2, 8>}]} {
    %c0_i32 = arith.constant 0 : i32
    %0 = arith.cmpi eq, %arg1, %c0_i32 : i32
    %1 = arith.extui %0 : i1 to i32
    %c0_i32_0 = arith.constant 0 : i32
    %2 = arith.cmpi ne, %1, %c0_i32_0 : i32
    scf.if %2 {
      %cst = arith.constant 0xFF800000 : f32
      %12 = vector.broadcast %cst : f32 to vector<2x8x128xf32>
      %c0_13 = arith.constant 0 : index
      %c0_14 = arith.constant 0 : index
      %c0_15 = arith.constant 0 : index
      %13 = vector.load %arg4[%c0_13, %c0_14, %c0_15] : memref<2x8x128xf32, #tpu.memory_space<vmem>>, vector<2x8x128xf32>
      tpu.vector_store %arg4[%c0_13, %c0_14, %c0_15], %12 {strides = array<i32>} : memref<2x8x128xf32, #tpu.memory_space<vmem>>, vector<2x8x128xf32>,
    } else {
    }
    %c0 = arith.constant 0 : index
    %c0_1 = arith.constant 0 : index
    %c0_2 = arith.constant 0 : index
    %3 = vector.load %arg2[%c0, %c0_1, %c0_2] : memref<2x8x256xf32, #tpu.memory_space<vmem>>, vector<2x8x128xf32>
    %c0_3 = arith.constant 0 : index
    %c0_4 = arith.constant 0 : index
    %c128 = arith.constant 128 : index
    %4 = vector.load %arg2[%c0_3, %c0_4, %c128] : memref<2x8x256xf32, #tpu.memory_space<vmem>>, vector<2x8x128xf32>
    %5 = arith.maximumf %3, %4 : vector<2x8x128xf32>
    %c0_5 = arith.constant 0 : index
    %c0_6 = arith.constant 0 : index
    %c0_7 = arith.constant 0 : index
    %6 = vector.load %arg4[%c0_5, %c0_6, %c0_7] : memref<2x8x128xf32, #tpu.memory_space<vmem>>, vector<2x8x128xf32>
    %7 = arith.maximumf %6, %5 : vector<2x8x128xf32>
    %c0_8 = arith.constant 0 : index
    %c0_9 = arith.constant 0 : index
    %c0_10 = arith.constant 0 : index
    %8 = vector.load %arg4[%c0_8, %c0_9, %c0_10] : memref<2x8x128xf32, #tpu.memory_space<vmem>>, vector<2x8x128xf32>
    tpu.vector_store %arg4[%c0_8, %c0_9, %c0_10], %7 {strides = array<i32>} : memref<2x8x128xf32, #tpu.memory_space<vmem>>, vector<2x8x128xf32>,
    %c0_i32_11 = arith.constant 0 : i32
    %9 = arith.cmpi eq, %arg1, %c0_i32_11 : i32
    %10 = arith.extui %9 : i1 to i32
    %c0_i32_12 = arith.constant 0 : i32
    %11 = arith.cmpi ne, %10, %c0_i32_12 : i32
    scf.if %11 {
      %c0_13 = arith.constant 0 : index
      %c0_14 = arith.constant 0 : index
      %c0_15 = arith.constant 0 : index
      %12 = vector.load %arg4[%c0_13, %c0_14, %c0_15] : memref<2x8x128xf32, #tpu.memory_space<vmem>>, vector<2x8x128xf32>
      %cst = arith.constant dense<0xFF800000> : vector<2x8xf32>
      %13 = vector.multi_reduction <maximumf>, %12, %cst [2] : vector<2x8x128xf32> to vector<2x8xf32>
      %c0_16 = arith.constant 0 : index
      %c0_17 = arith.constant 0 : index
      %14 = vector.load %arg3[%c0_16, %c0_17] : memref<2x8xf32, #tpu.memory_space<vmem>>, vector<2x8xf32>
      tpu.vector_store %arg3[%c0_16, %c0_17], %13 {strides = array<i32>} : memref<2x8xf32, #tpu.memory_space<vmem>>, vector<2x8xf32>,
    } else {
    }
    return
  }
  func.func @transform_0(%arg0: i32, %arg1: i32) -> (i32, i32, i32) {
    %c0_i32 = arith.constant 0 : i32
    %c0_i32_0 = arith.constant 0 : i32
    return %c0_i32, %arg0, %arg1 : i32, i32, i32
  }
  func.func @transform_1(%arg0: i32, %arg1: i32) -> (i32, i32) {
    %c0_i32 = arith.constant 0 : i32
    %c0_i32_0 = arith.constant 0 : i32
    return %c0_i32, %arg0 : i32, i32
  }
}

</mosaic_0001>

<bundles_post_ra>
// kernel: tpu_custom_call.1
= control target key start
LH: loop header
LB: loop body
LE: loop exit
PB: predicated region body
PF: predicated region fallthrough
CT: control target
= control target key end

     0   :  { %6 = vsyncpa [#allocation4], 0  ;;  %s172_s0 = inlined_call_operand.hbm [shape: f32[2,8,256], index: 0, kind: input, shape index: {}]   ;;  %s173_s1 = inlined_call_operand.hbm [shape: f32[2,8], index: 1, kind: output, shape index: {}]  }
   0x1   :  { %7 = vsyncpa [#allocation5], 0  ;;  %s134_s6 = smov [#allocation3]   ;;  %s86_s10 = scalar_lea.hbm %s172_s0, 512 }
   0x2   :  { %s13_s7 = sshll.u32 %s134_s6, 4  ;;  %p87_p0 = scmp.ne.s32.totalorder %s172_s0, %s86_s10  ;;  %s14_s7 = int_to_ptr.vmem [resolvable:$true] %s13_s7 }
   0x3   :  { %p90_p1 = scmp.lt.u32.totalorder %s86_s10, %s172_s0 }
   0x5   :  { %p92_p2 = pnand %p90_p1, %p87_p0 }
   0x7   :  { %95 = shalt.err (!%p92_p2)
}
   0x8   :  { %s96_s15 = scalar_lea.vmem %s14_s7, 512  ;;  %p101_p4 = scmp.lt.s32.totalorder %s14_s7, %s14_s7 }
   0x9   :  { %p97_p3 = scmp.ne.s32.totalorder %s14_s7, %s96_s15  ;;  %p102_p5 = scmp.lt.s32.totalorder %s96_s15, %s96_s15 }
   0xb   :  { %p103_p6 = por %p102_p5, %p101_p4 }
   0xd   :  { %p104_p7 = pnand %p103_p6, %p97_p3 }
   0xf   :  { %107 = shalt.err (!%p104_p7)
}
  0x10   :  { %s135_s16 = smov 256   ;;  %s136_s17 = smov 16  }
  0x11   :  { %19 = dma.hbm_to_vmem [thread:$0]  %s172_s0, 512, %s14_s7, [#allocation4], %s135_s16, %s135_s16, %s136_s17  }
  0x12   :  { %130 = dma.done.wait [#allocation4], 512  }
  0x13   :  { %131 = vsyncadd [#allocation4], 4294966784  ;;  %v29_v0 = vld [vmem:[#allocation3] sm:$0xff]  ;;  %v31_v1 = vld [vmem:[#allocation3 + $0x8] sm:$0xff]  ;;  %v52_v6 = vlaneseq  ;;  %s137_s20 = smov [#allocation6]   ;;  %vm62_vm0 = vcmask 1041409  }
  0x14   :  { %v30_v2 = vld [vmem:[#allocation3 + $0x10] sm:$0xff]  ;;  %v33_v3 = vmax.f32 %v29_v0, %v31_v1  ;;  %v32_v4 = vld [vmem:[#allocation3 + $0x18] sm:$0xff]  ;;  %s73_s21 = sshll.u32 %s137_s20, 4  ;;  %vm65_vm1 = vcmask 58368   ;;  %s74_s21 = int_to_ptr.vmem [resolvable:$true] %s73_s21 }
  0x15   :  { %v34_v5 = vmax.f32 %v30_v2, %v32_v4  ;;  %v53_v7 = vand.u32 127, %v52_v6  ;;  %v55_v8 = vshrl.u32 %v52_v6, 7  ;;  %s108_s0 = scalar_lea.vmem %s74_s21, 32  ;;  %p113_p9 = scmp.lt.s32.totalorder %s74_s21, %s74_s21 }
  0x16   :  { %46 = vmax.xlane.f32.xlu0 %v33_v3  ;;  %p109_p8 = scmp.ne.s32.totalorder %s74_s21, %s108_s0  ;;  %p114_p10 = scmp.lt.s32.totalorder %s108_s0, %s108_s0 }
  0x17   :  { %v56_v10 = vsub.s32 %v53_v7, %v55_v8 }
  0x18   :  { %p115_p11 = por %p114_p10, %p113_p9 }
  0x1a   :  { %48 = vmax.xlane.f32.xlu0 %v34_v5  ;;  %p116_p12 = pnand %p115_p11, %p109_p8 }
  0xa3   :  { %v47_v9 = vpop.xlane.xlu0 %46 }
  0xa4   :  { %v57_v12 = vrot.slane %v47_v9, %v56_v10 }
  0xa7   :  { %v49_v11 = vpop.xlane.xlu0 %48 }
  0xa8   :  { %v61_v13 = vrot.slane %v49_v11, %v56_v10 }
  0xaa   :  { %v63_v14 = vsel %vm62_vm0, %v61_v13, %v57_v12 }
  0xab   :  { %66 = vst.msk [vmem:[#allocation6] sm:$0x3] %vm65_vm1, %v63_v14 }
  0xac   :  { %119 = shalt.err (!%p116_p12)
}
  0xad   :  { %s120_s24 = scalar_lea.hbm %s173_s1, 32 }
  0xae   :  { %p121_p13 = scmp.ne.s32.totalorder %s173_s1, %s120_s24  ;;  %p124_p0 = scmp.lt.u32.totalorder %s120_s24, %s173_s1 }
  0xb0   :  { %p126_p1 = pnand %p124_p0, %p121_p13 }
  0xb2   :  { %129 = shalt.err (!%p126_p1)
}
  0xb3   :  { %76 = dma.vmem_to_hbm [thread:$0]  %s74_s21, 32, %s173_s1, [#allocation5]  }
  0xb4   :  { %132 = dma.done.wait [#allocation5], 32  }
  0xb5   :  { %133 = vsyncadd [#allocation5], 4294967264 }
  0xb6   :  { %80 = vsyncpa [#allocation4], 1 }
  0xb7   :  { %81 = vsyncpa [#allocation5], 1 }

</bundles_post_ra>
